<compile_context>
chip_gen: v5e
topology: v5e:2x2
jax: 0.10.0
libtpu: 0.0.40
codegen_flags: <defaults>
</compile_context>

<pallas_src>
import jax
import jax.numpy as jnp
from jax.experimental import pallas as pl
from jax.experimental.pallas import tpu as pltpu


_LANE = 128
_SUBLANE = 8


def _cdiv(a, b):
    return -(-a // b)


def _round_up(a, b):
    return _cdiv(a, b) * b


# ---------------------------------------------------------------------------
# Kernels
# ---------------------------------------------------------------------------
def _outconv_vpu_kernel(x_ref, w_ref, b_ref, o_ref):
    """Unrolled VPU multiply-accumulate on dense (rows, 128) slabs.

    x_ref: VMEM (n_tile, C_in, R, 128)   activation tile
    w_ref: SMEM (C_out, C_in)            scalar weights (f32)
    b_ref: SMEM (C_out,)                 scalar bias (f32)
    o_ref: VMEM (n_tile, C_out, R, 128)  output tile
    """
    c_out, c_in = w_ref.shape
    for oc in range(c_out):
        # Read each channel slab inside the loop; the widen-to-f32 fuses into
        # the MAC (no materialized full-tile f32 copy).
        acc = x_ref[:, 0].astype(jnp.float32) * w_ref[oc, 0]
        for ic in range(1, c_in):
            acc = acc + x_ref[:, ic].astype(jnp.float32) * w_ref[oc, ic]
        o_ref[:, oc] = (acc + b_ref[oc]).astype(o_ref.dtype)


def _outconv_mxu_kernel(x_ref, w_ref, b_ref, o_ref):
    """MXU path for larger channel counts.

    x_ref: VMEM (n_tile, C_in, T); w_ref: VMEM (C_out, C_in) in x dtype;
    b_ref: VMEM (C_out, 1) f32;    o_ref: VMEM (n_tile, C_out, T)
    """
    n_t = x_ref.shape[0]
    for b in range(n_t):
        acc = jnp.dot(w_ref[...], x_ref[b], preferred_element_type=jnp.float32)
        o_ref[b] = (acc + b_ref[...]).astype(o_ref.dtype)


# ---------------------------------------------------------------------------
# Tiling plan
# ---------------------------------------------------------------------------
def _vmem_plan():
    """(tile_budget_bytes, vmem_limit_bytes), generation-aware."""
    cap = 64 * 1024 * 1024  # conservative default = v7x physical VMEM
    try:
        info = pltpu.get_tpu_info()
        cap = int(getattr(info, "vmem_capacity_bytes", cap)) or cap
    except Exception:
        pass
    tile_budget = cap // 5                      # one (in + out) buffer set
    vmem_limit = int(min(cap - 2 * 1024 * 1024, 3 * tile_budget))
    return tile_budget, vmem_limit


def _plan_tiles(n, c_in, c_out, rows, itemsize, tile_budget, max_rows=4096):
    """Pick (n_tile, r_tile, r_pad).

    rows = ceil(H*W / 128).  Blocks are (n_tile, C, r_tile, 128); r_pad is the
    row count after padding so that r_tile divides it exactly.
    """
    bytes_per_row = (c_in + c_out) * _LANE * itemsize

    def tile_bytes(n_t, r_t):
        return n_t * _round_up(r_t, _SUBLANE) * bytes_per_row

    # Whole image fits in one step: batch as many images as possible per step.
    if rows <= max_rows and tile_bytes(1, rows) <= tile_budget:
        n_tile = 1
        for d in range(n, 0, -1):
            if n % d == 0 and tile_bytes(d, rows) <= tile_budget:
                n_tile = d
                break
        return n_tile, rows, rows

    # Big image: one image per step, split rows into near-equal chunks so
    # padding stays tiny (<= ~8 rows per chunk) instead of collapsing to
    # 128-pixel tiles.
    target = min(max_rows, tile_budget // bytes_per_row)
    target = max(_SUBLANE, target - target % _SUBLANE)
    k = _cdiv(rows, target)
    r_tile = _round_up(_cdiv(rows, k), _SUBLANE)
    return 1, r_tile, k * r_tile


# ---------------------------------------------------------------------------
# Wrapper
# ---------------------------------------------------------------------------
@jax.jit
def out_conv(x_nchw, weight, bias):
    """1x1 conv (OutConv.forward).

    x_nchw: (N, C_in, H, W); weight: (C_out, C_in) or (C_out, C_in, 1, 1);
    bias: (C_out,).  Returns (N, C_out, H, W) in x's dtype.
    """
    n, c_in, h, w = x_nchw.shape
    c_out = bias.shape[0]
    weight = weight.reshape(c_out, c_in)        # accept Conv2d's (O, I, 1, 1)
    hw = h * w
    rows = _cdiv(hw, _LANE)

    tile_budget, vmem_limit = _vmem_plan()
    use_vpu = (c_in * c_out) <= 32              # tiny contraction: skip MXU

    n_tile, r_tile, r_pad = _plan_tiles(
        n, c_in, c_out, rows, x_nchw.dtype.itemsize, tile_budget)
    hw_pad = r_pad * _LANE

    x3 = x_nchw.reshape(n, c_in, hw)            # free reshape (NCHW-direct)
    if hw_pad != hw:
        x3 = jnp.pad(x3, ((0, 0), (0, 0), (0, hw_pad - hw)))

    grid = (n // n_tile, r_pad // r_tile)

    if use_vpu:
        x4 = x3.reshape(n, c_in, r_pad, _LANE)  # free reshape, dense slabs
        kernel = _outconv_vpu_kernel
        in_specs = [
            pl.BlockSpec((n_tile, c_in, r_tile, _LANE),
                         lambda b, i: (b, 0, i, 0)),
            pl.BlockSpec(memory_space=pltpu.MemorySpace.SMEM),
            pl.BlockSpec(memory_space=pltpu.MemorySpace.SMEM),
        ]
        out_specs = pl.BlockSpec((n_tile, c_out, r_tile, _LANE),
                                 lambda b, i: (b, 0, i, 0))
        out_shape = jax.ShapeDtypeStruct((n, c_out, r_pad, _LANE),
                                         x_nchw.dtype)
        args = (x4, weight.astype(jnp.float32), bias.astype(jnp.float32))
    else:
        t_pix = r_tile * _LANE
        kernel = _outconv_mxu_kernel
        in_specs = [
            pl.BlockSpec((n_tile, c_in, t_pix), lambda b, i: (b, 0, i)),
            pl.BlockSpec((c_out, c_in), lambda b, i: (0, 0)),
            pl.BlockSpec((c_out, 1), lambda b, i: (0, 0)),
        ]
        out_specs = pl.BlockSpec((n_tile, c_out, t_pix), lambda b, i: (b, 0, i))
        out_shape = jax.ShapeDtypeStruct((n, c_out, hw_pad), x_nchw.dtype)
        args = (x3, weight.astype(x_nchw.dtype),
                bias.astype(jnp.float32).reshape(c_out, 1))

    out = pl.pallas_call(
        kernel,
        out_shape=out_shape,
        grid_spec=pltpu.PrefetchScalarGridSpec(
            num_scalar_prefetch=0,
            grid=grid,
            in_specs=in_specs,
            out_specs=out_specs,
        ),
        compiler_params=pltpu.CompilerParams(
            dimension_semantics=("parallel", "parallel"),
            vmem_limit_bytes=vmem_limit,
        ),
    )(*args)

    out3 = out.reshape(n, c_out, hw_pad)
    if hw_pad != hw:
        out3 = out3[:, :, :hw]
    return out3.reshape(n, c_out, h, w)


def reference_out_conv(x_nchw, weight, bias):
    # Pure-JAX reference (einsum over channels).
    w2 = weight.reshape(bias.shape[0], x_nchw.shape[1])
    return jnp.einsum("nchw,oc->nohw", x_nchw, w2) + bias[None, :, None, None]


if __name__ == "__main__":
    key = jax.random.PRNGKey(0)
    k_x, k_w, k_b = jax.random.split(key, 3)

    # Module config: in_channels=4, out_channels=3; input (N, C_in, H, W).
    in_channels, out_channels = 4, 3
    batch, spatial = 2, 16

    x = jax.random.normal(k_x, (batch, in_channels, spatial, spatial),
                          jnp.float32)
    weight = jax.random.normal(k_w, (out_channels, in_channels),
                               jnp.float32) * 0.1
    bias = jax.random.normal(k_b, (out_channels,), jnp.float32) * 0.1

    y = jax.block_until_ready(out_conv(x, weight, bias))

    y_ref = reference_out_conv(x, weight, bias)
    assert y.shape == (batch, out_channels, spatial, spatial), y.shape
    assert jnp.allclose(y, y_ref, atol=1e-5, rtol=1e-5), "mismatch vs reference"

    print("KERNEL_OK")
</pallas_src>

<mosaic_0001>
module attributes {stable_mosaic.version = 11 : i64} {
  func.func @_outconv_vpu_kernel(%arg0: i32, %arg1: i32, %arg2: memref<2x4x2x128xf32, #tpu.memory_space<vmem>>, %arg3: memref<3x4xf32, #tpu.memory_space<smem>>, %arg4: memref<3xf32, #tpu.memory_space<smem>>, %arg5: memref<2x3x2x128xf32, #tpu.memory_space<vmem>>) attributes {dimension_semantics = [#tpu.dimension_semantics<parallel>, #tpu.dimension_semantics<parallel>], iteration_bounds = array<i64: 1, 1>, scalar_prefetch = 0 : i64, scratch_operands = 0 : i64, tpu.core_type = #tpu.core_type<tc>, window_params = [{transform_indices = @transform_0, window_bounds = array<i64: 2, 4, 2, 128>}, {transform_indices = @transform_1, window_bounds = array<i64: 3, 4>}, {transform_indices = @transform_2, window_bounds = array<i64: 3>}, {transform_indices = @transform_3, window_bounds = array<i64: 2, 3, 2, 128>}]} {
    %c0 = arith.constant 0 : index
    %c0_0 = arith.constant 0 : index
    %c0_1 = arith.constant 0 : index
    %c0_2 = arith.constant 0 : index
    %0 = vector.load %arg2[%c0, %c0_0, %c0_1, %c0_2] : memref<2x4x2x128xf32, #tpu.memory_space<vmem>>, vector<2x1x2x128xf32>
    %1 = vector.shape_cast %0 : vector<2x1x2x128xf32> to vector<2x2x128xf32>
    %c0_3 = arith.constant 0 : index
    %c0_4 = arith.constant 0 : index
    %2 = memref.load %arg3[%c0_3, %c0_4] : memref<3x4xf32, #tpu.memory_space<smem>>
    %3 = vector.broadcast %2 : f32 to vector<2x2x128xf32>
    %4 = arith.mulf %1, %3 : vector<2x2x128xf32>
    %c0_5 = arith.constant 0 : index
    %c1 = arith.constant 1 : index
    %c0_6 = arith.constant 0 : index
    %c0_7 = arith.constant 0 : index
    %5 = vector.load %arg2[%c0_5, %c1, %c0_6, %c0_7] : memref<2x4x2x128xf32, #tpu.memory_space<vmem>>, vector<2x1x2x128xf32>
    %6 = vector.shape_cast %5 : vector<2x1x2x128xf32> to vector<2x2x128xf32>
    %c0_8 = arith.constant 0 : index
    %c1_9 = arith.constant 1 : index
    %7 = memref.load %arg3[%c0_8, %c1_9] : memref<3x4xf32, #tpu.memory_space<smem>>
    %8 = vector.broadcast %7 : f32 to vector<2x2x128xf32>
    %9 = arith.mulf %6, %8 : vector<2x2x128xf32>
    %10 = arith.addf %4, %9 : vector<2x2x128xf32>
    %c0_10 = arith.constant 0 : index
    %c2 = arith.constant 2 : index
    %c0_11 = arith.constant 0 : index
    %c0_12 = arith.constant 0 : index
    %11 = vector.load %arg2[%c0_10, %c2, %c0_11, %c0_12] : memref<2x4x2x128xf32, #tpu.memory_space<vmem>>, vector<2x1x2x128xf32>
    %12 = vector.shape_cast %11 : vector<2x1x2x128xf32> to vector<2x2x128xf32>
    %c0_13 = arith.constant 0 : index
    %c2_14 = arith.constant 2 : index
    %13 = memref.load %arg3[%c0_13, %c2_14] : memref<3x4xf32, #tpu.memory_space<smem>>
    %14 = vector.broadcast %13 : f32 to vector<2x2x128xf32>
    %15 = arith.mulf %12, %14 : vector<2x2x128xf32>
    %16 = arith.addf %10, %15 : vector<2x2x128xf32>
    %c0_15 = arith.constant 0 : index
    %c3 = arith.constant 3 : index
    %c0_16 = arith.constant 0 : index
    %c0_17 = arith.constant 0 : index
    %17 = vector.load %arg2[%c0_15, %c3, %c0_16, %c0_17] : memref<2x4x2x128xf32, #tpu.memory_space<vmem>>, vector<2x1x2x128xf32>
    %18 = vector.shape_cast %17 : vector<2x1x2x128xf32> to vector<2x2x128xf32>
    %c0_18 = arith.constant 0 : index
    %c3_19 = arith.constant 3 : index
    %19 = memref.load %arg3[%c0_18, %c3_19] : memref<3x4xf32, #tpu.memory_space<smem>>
    %20 = vector.broadcast %19 : f32 to vector<2x2x128xf32>
    %21 = arith.mulf %18, %20 : vector<2x2x128xf32>
    %22 = arith.addf %16, %21 : vector<2x2x128xf32>
    %c0_20 = arith.constant 0 : index
    %23 = memref.load %arg4[%c0_20] : memref<3xf32, #tpu.memory_space<smem>>
    %24 = vector.broadcast %23 : f32 to vector<2x2x128xf32>
    %25 = arith.addf %22, %24 : vector<2x2x128xf32>
    %c0_21 = arith.constant 0 : index
    %c0_22 = arith.constant 0 : index
    %c0_23 = arith.constant 0 : index
    %c0_24 = arith.constant 0 : index
    %26 = vector.load %arg5[%c0_21, %c0_22, %c0_23, %c0_24] : memref<2x3x2x128xf32, #tpu.memory_space<vmem>>, vector<2x1x2x128xf32>
    %27 = vector.shape_cast %26 : vector<2x1x2x128xf32> to vector<2x2x128xf32>
    %28 = vector.shape_cast %25 : vector<2x2x128xf32> to vector<2x1x2x128xf32>
    tpu.vector_store %arg5[%c0_21, %c0_22, %c0_23, %c0_24], %28 {strides = array<i32>} : memref<2x3x2x128xf32, #tpu.memory_space<vmem>>, vector<2x1x2x128xf32>,
    %c0_25 = arith.constant 0 : index
    %c0_26 = arith.constant 0 : index
    %c0_27 = arith.constant 0 : index
    %c0_28 = arith.constant 0 : index
    %29 = vector.load %arg2[%c0_25, %c0_26, %c0_27, %c0_28] : memref<2x4x2x128xf32, #tpu.memory_space<vmem>>, vector<2x1x2x128xf32>
    %30 = vector.shape_cast %29 : vector<2x1x2x128xf32> to vector<2x2x128xf32>
    %c1_29 = arith.constant 1 : index
    %c0_30 = arith.constant 0 : index
    %31 = memref.load %arg3[%c1_29, %c0_30] : memref<3x4xf32, #tpu.memory_space<smem>>
    %32 = vector.broadcast %31 : f32 to vector<2x2x128xf32>
    %33 = arith.mulf %30, %32 : vector<2x2x128xf32>
    %c0_31 = arith.constant 0 : index
    %c1_32 = arith.constant 1 : index
    %c0_33 = arith.constant 0 : index
    %c0_34 = arith.constant 0 : index
    %34 = vector.load %arg2[%c0_31, %c1_32, %c0_33, %c0_34] : memref<2x4x2x128xf32, #tpu.memory_space<vmem>>, vector<2x1x2x128xf32>
    %35 = vector.shape_cast %34 : vector<2x1x2x128xf32> to vector<2x2x128xf32>
    %c1_35 = arith.constant 1 : index
    %c1_36 = arith.constant 1 : index
    %36 = memref.load %arg3[%c1_35, %c1_36] : memref<3x4xf32, #tpu.memory_space<smem>>
    %37 = vector.broadcast %36 : f32 to vector<2x2x128xf32>
    %38 = arith.mulf %35, %37 : vector<2x2x128xf32>
    %39 = arith.addf %33, %38 : vector<2x2x128xf32>
    %c0_37 = arith.constant 0 : index
    %c2_38 = arith.constant 2 : index
    %c0_39 = arith.constant 0 : index
    %c0_40 = arith.constant 0 : index
    %40 = vector.load %arg2[%c0_37, %c2_38, %c0_39, %c0_40] : memref<2x4x2x128xf32, #tpu.memory_space<vmem>>, vector<2x1x2x128xf32>
    %41 = vector.shape_cast %40 : vector<2x1x2x128xf32> to vector<2x2x128xf32>
    %c1_41 = arith.constant 1 : index
    %c2_42 = arith.constant 2 : index
    %42 = memref.load %arg3[%c1_41, %c2_42] : memref<3x4xf32, #tpu.memory_space<smem>>
    %43 = vector.broadcast %42 : f32 to vector<2x2x128xf32>
    %44 = arith.mulf %41, %43 : vector<2x2x128xf32>
    %45 = arith.addf %39, %44 : vector<2x2x128xf32>
    %c0_43 = arith.constant 0 : index
    %c3_44 = arith.constant 3 : index
    %c0_45 = arith.constant 0 : index
    %c0_46 = arith.constant 0 : index
    %46 = vector.load %arg2[%c0_43, %c3_44, %c0_45, %c0_46] : memref<2x4x2x128xf32, #tpu.memory_space<vmem>>, vector<2x1x2x128xf32>
    %47 = vector.shape_cast %46 : vector<2x1x2x128xf32> to vector<2x2x128xf32>
    %c1_47 = arith.constant 1 : index
    %c3_48 = arith.constant 3 : index
    %48 = memref.load %arg3[%c1_47, %c3_48] : memref<3x4xf32, #tpu.memory_space<smem>>
    %49 = vector.broadcast %48 : f32 to vector<2x2x128xf32>
    %50 = arith.mulf %47, %49 : vector<2x2x128xf32>
    %51 = arith.addf %45, %50 : vector<2x2x128xf32>
    %c1_49 = arith.constant 1 : index
    %52 = memref.load %arg4[%c1_49] : memref<3xf32, #tpu.memory_space<smem>>
    %53 = vector.broadcast %52 : f32 to vector<2x2x128xf32>
    %54 = arith.addf %51, %53 : vector<2x2x128xf32>
    %c0_50 = arith.constant 0 : index
    %c1_51 = arith.constant 1 : index
    %c0_52 = arith.constant 0 : index
    %c0_53 = arith.constant 0 : index
    %55 = vector.load %arg5[%c0_50, %c1_51, %c0_52, %c0_53] : memref<2x3x2x128xf32, #tpu.memory_space<vmem>>, vector<2x1x2x128xf32>
    %56 = vector.shape_cast %55 : vector<2x1x2x128xf32> to vector<2x2x128xf32>
    %57 = vector.shape_cast %54 : vector<2x2x128xf32> to vector<2x1x2x128xf32>
    tpu.vector_store %arg5[%c0_50, %c1_51, %c0_52, %c0_53], %57 {strides = array<i32>} : memref<2x3x2x128xf32, #tpu.memory_space<vmem>>, vector<2x1x2x128xf32>,
    %c0_54 = arith.constant 0 : index
    %c0_55 = arith.constant 0 : index
    %c0_56 = arith.constant 0 : index
    %c0_57 = arith.constant 0 : index
    %58 = vector.load %arg2[%c0_54, %c0_55, %c0_56, %c0_57] : memref<2x4x2x128xf32, #tpu.memory_space<vmem>>, vector<2x1x2x128xf32>
    %59 = vector.shape_cast %58 : vector<2x1x2x128xf32> to vector<2x2x128xf32>
    %c2_58 = arith.constant 2 : index
    %c0_59 = arith.constant 0 : index
    %60 = memref.load %arg3[%c2_58, %c0_59] : memref<3x4xf32, #tpu.memory_space<smem>>
    %61 = vector.broadcast %60 : f32 to vector<2x2x128xf32>
    %62 = arith.mulf %59, %61 : vector<2x2x128xf32>
    %c0_60 = arith.constant 0 : index
    %c1_61 = arith.constant 1 : index
    %c0_62 = arith.constant 0 : index
    %c0_63 = arith.constant 0 : index
    %63 = vector.load %arg2[%c0_60, %c1_61, %c0_62, %c0_63] : memref<2x4x2x128xf32, #tpu.memory_space<vmem>>, vector<2x1x2x128xf32>
    %64 = vector.shape_cast %63 : vector<2x1x2x128xf32> to vector<2x2x128xf32>
    %c2_64 = arith.constant 2 : index
    %c1_65 = arith.constant 1 : index
    %65 = memref.load %arg3[%c2_64, %c1_65] : memref<3x4xf32, #tpu.memory_space<smem>>
    %66 = vector.broadcast %65 : f32 to vector<2x2x128xf32>
    %67 = arith.mulf %64, %66 : vector<2x2x128xf32>
    %68 = arith.addf %62, %67 : vector<2x2x128xf32>
    %c0_66 = arith.constant 0 : index
    %c2_67 = arith.constant 2 : index
    %c0_68 = arith.constant 0 : index
    %c0_69 = arith.constant 0 : index
    %69 = vector.load %arg2[%c0_66, %c2_67, %c0_68, %c0_69] : memref<2x4x2x128xf32, #tpu.memory_space<vmem>>, vector<2x1x2x128xf32>
    %70 = vector.shape_cast %69 : vector<2x1x2x128xf32> to vector<2x2x128xf32>
    %c2_70 = arith.constant 2 : index
    %c2_71 = arith.constant 2 : index
    %71 = memref.load %arg3[%c2_70, %c2_71] : memref<3x4xf32, #tpu.memory_space<smem>>
    %72 = vector.broadcast %71 : f32 to vector<2x2x128xf32>
    %73 = arith.mulf %70, %72 : vector<2x2x128xf32>
    %74 = arith.addf %68, %73 : vector<2x2x128xf32>
    %c0_72 = arith.constant 0 : index
    %c3_73 = arith.constant 3 : index
    %c0_74 = arith.constant 0 : index
    %c0_75 = arith.constant 0 : index
    %75 = vector.load %arg2[%c0_72, %c3_73, %c0_74, %c0_75] : memref<2x4x2x128xf32, #tpu.memory_space<vmem>>, vector<2x1x2x128xf32>
    %76 = vector.shape_cast %75 : vector<2x1x2x128xf32> to vector<2x2x128xf32>
    %c2_76 = arith.constant 2 : index
    %c3_77 = arith.constant 3 : index
    %77 = memref.load %arg3[%c2_76, %c3_77] : memref<3x4xf32, #tpu.memory_space<smem>>
    %78 = vector.broadcast %77 : f32 to vector<2x2x128xf32>
    %79 = arith.mulf %76, %78 : vector<2x2x128xf32>
    %80 = arith.addf %74, %79 : vector<2x2x128xf32>
    %c2_78 = arith.constant 2 : index
    %81 = memref.load %arg4[%c2_78] : memref<3xf32, #tpu.memory_space<smem>>
    %82 = vector.broadcast %81 : f32 to vector<2x2x128xf32>
    %83 = arith.addf %80, %82 : vector<2x2x128xf32>
    %c0_79 = arith.constant 0 : index
    %c2_80 = arith.constant 2 : index
    %c0_81 = arith.constant 0 : index
    %c0_82 = arith.constant 0 : index
    %84 = vector.load %arg5[%c0_79, %c2_80, %c0_81, %c0_82] : memref<2x3x2x128xf32, #tpu.memory_space<vmem>>, vector<2x1x2x128xf32>
    %85 = vector.shape_cast %84 : vector<2x1x2x128xf32> to vector<2x2x128xf32>
    %86 = vector.shape_cast %83 : vector<2x2x128xf32> to vector<2x1x2x128xf32>
    tpu.vector_store %arg5[%c0_79, %c2_80, %c0_81, %c0_82], %86 {strides = array<i32>} : memref<2x3x2x128xf32, #tpu.memory_space<vmem>>, vector<2x1x2x128xf32>,
    return
  }
  func.func @transform_0(%arg0: i32, %arg1: i32) -> (i32, i32, i32, i32) {
    %c0_i32 = arith.constant 0 : i32
    %c0_i32_0 = arith.constant 0 : i32
    %c0_i32_1 = arith.constant 0 : i32
    return %arg0, %c0_i32, %arg1, %c0_i32_0 : i32, i32, i32, i32
  }
  func.func @transform_1(%arg0: i32, %arg1: i32) -> (i32, i32) {
    %c0_i32 = arith.constant 0 : i32
    %c0_i32_0 = arith.constant 0 : i32
    %c0_i32_1 = arith.constant 0 : i32
    return %c0_i32, %c0_i32_0 : i32, i32
  }
  func.func @transform_2(%arg0: i32, %arg1: i32) -> i32 {
    %c0_i32 = arith.constant 0 : i32
    %c0_i32_0 = arith.constant 0 : i32
    return %c0_i32 : i32
  }
  func.func @transform_3(%arg0: i32, %arg1: i32) -> (i32, i32, i32, i32) {
    %c0_i32 = arith.constant 0 : i32
    %c0_i32_0 = arith.constant 0 : i32
    %c0_i32_1 = arith.constant 0 : i32
    return %arg0, %c0_i32, %arg1, %c0_i32_0 : i32, i32, i32, i32
  }
}

</mosaic_0001>

<bundles_post_ra>
// kernel: out_conv.1
= control target key start
LH: loop header
LB: loop body
LE: loop exit
PB: predicated region body
PF: predicated region fallthrough
CT: control target
= control target key end

     0   :  { %8 = vsyncpa [#allocation3], 0  ;;  %s377_s0 = inlined_call_operand.vmem [shape: f32[2,4,2,128], index: 0, kind: input, shape index: {}]   ;;  %s378_s1 = inlined_call_operand.vmem [shape: f32[3,4], index: 1, kind: input, shape index: {}]   ;;  %s379_s2 = inlined_call_operand.vmem [shape: f32[3], index: 2, kind: input, shape index: {}]   ;;  %s380_s3 = inlined_call_operand.vmem [shape: f32[2,3,2,128], index: 3, kind: output, shape index: {}]  }
   0x1   :  { %s17_s14 = sshll.u32 %s378_s1, 4  ;;  %s18_s14 = int_to_ptr.vmem [resolvable:$true] %s17_s14 }
   0x2   :  { %9 = vsyncpa [#allocation5], 0  ;;  %s26_s17 = sshll.u32 %s379_s2, 4  ;;  %s223_s18 = smov [#allocation2]   ;;  %s27_s17 = int_to_ptr.vmem [resolvable:$true] %s26_s17 }
   0x3   :  { %20 = dma.vmem_to_smem %s18_s14, 64, %s223_s18, [#allocation3]  }
   0x4   :  { %s224_s19 = smov [#allocation4]  }
   0x5   :  { %29 = dma.vmem_to_smem %s27_s17, 16, %s224_s19, [#allocation5]  }
   0x6   :  { %219 = dma.done.wait [#allocation3], 64  }
   0x7   :  { %220 = vsyncadd [#allocation3], 4294967232 }
   0x8   :  { %221 = dma.done.wait [#allocation5], 16  }
   0x9   :  { %222 = vsyncadd [#allocation5], 4294967280 }
   0xa   :  { %38 = sfence }
   0xb   :  { %s41_s20 = sld [smem:[#allocation2]]  ;;  %v39_v0 = vld [vmem:[%s377_s0] sm:$0x3]  ;;  %v40_v1 = vld [vmem:[%s377_s0 + $0x8] sm:$0x3] }
   0xc   :  { %s160_s21 = sld [smem:[#allocation2 + $0x1]]  ;;  %v158_v2 = vld [vmem:[%s377_s0 + $0x2] sm:$0x3]  ;;  %v159_v3 = vld [vmem:[%s377_s0 + $0xa] sm:$0x3] }
   0xd   :  { %s163_s22 = sld [smem:[#allocation2 + $0x2]]  ;;  %v161_v5 = vld [vmem:[%s377_s0 + $0x4] sm:$0x3]  ;;  %v162_v6 = vld [vmem:[%s377_s0 + $0xc] sm:$0x3] }
   0xe   :  { %s251_s1 = sld [smem:[#allocation2 + $0x3]]  ;;  %v164_v9 = vld [vmem:[%s377_s0 + $0x6] sm:$0x3]  ;;  %v165_v14 = vld [vmem:[%s377_s0 + $0xe] sm:$0x3] }
   0xf   :  { %s256_s2 = sld [smem:[#allocation4]]  ;;  %v78_v18 = vld [vmem:[%s377_s0] sm:$0x3]  ;;  %v168_v19 = vld [vmem:[%s377_s0 + $0x2] sm:$0x3] }
  0x10   :  { %s267_s4 = sld [smem:[#allocation2 + $0x80]]  ;;  %v79_v23 = vld [vmem:[%s377_s0 + $0x8] sm:$0x3]  ;;  %v169_v24 = vld [vmem:[%s377_s0 + $0xa] sm:$0x3] }
  0x11   :  { %v42_v4 = vstv %s41_s20  ;;  %s275_s9 = sld [smem:[#allocation2 + $0x81]]  ;;  %v171_v28 = vld [vmem:[%s377_s0 + $0x4] sm:$0x3]  ;;  %v174_v33 = vld [vmem:[%s377_s0 + $0x6] sm:$0x3] }
  0x12   :  { %v43_v7 = vmul.f32 %v42_v4, %v39_v0  ;;  %v49_v8 = vstv %s160_s21  ;;  %v44_v10 = vmul.f32 %v42_v4, %v40_v1  ;;  %s280_s12 = sld [smem:[#allocation2 + $0x82]]  ;;  %v172_v38 = vld [vmem:[%s377_s0 + $0xc] sm:$0x3]  ;;  %v175_v39 = vld [vmem:[%s377_s0 + $0xe] sm:$0x3] }
  0x13   :  { %v50_v11 = vmul.f32 %v158_v2, %v49_v8  ;;  %v58_v12 = vstv %s163_s22  ;;  %v51_v13 = vmul.f32 %v159_v3, %v49_v8  ;;  %s285_s15 = sld [smem:[#allocation2 + $0x83]]  ;;  %v115_v47 = vld [vmem:[%s377_s0] sm:$0x3]  ;;  %v181_v48 = vld [vmem:[%s377_s0 + $0x2] sm:$0x3] }
  0x14   :  { %v59_v15 = vmul.f32 %v161_v5, %v58_v12  ;;  %v67_v16 = vstv %s251_s1  ;;  %v60_v17 = vmul.f32 %v162_v6, %v58_v12  ;;  %s294_s20 = sld [smem:[#allocation4 + $0x1]]  ;;  %v184_v53 = vld [vmem:[%s377_s0 + $0x4] sm:$0x3]  ;;  %v116_v54 = vld [vmem:[%s377_s0 + $0x8] sm:$0x3] }
  0x15   :  { %v52_v20 = vadd.f32 %v50_v11, %v43_v7  ;;  %v68_v21 = vmul.f32 %v164_v9, %v67_v16  ;;  %v53_v22 = vadd.f32 %v51_v13, %v44_v10  ;;  %s302_s24 = sld [smem:[#allocation2 + $0x100]]  ;;  %v73_v25 = vstv %s256_s2  ;;  %v187_v59 = vld [vmem:[%s377_s0 + $0x6] sm:$0x3]  ;;  %v182_v0 = vld [vmem:[%s377_s0 + $0xa] sm:$0x3] }
  0x16   :  { %v69_v26 = vmul.f32 %v165_v14, %v67_v16  ;;  %v81_v27 = vstv %s267_s4  ;;  %s309_s27 = sld [smem:[#allocation2 + $0x101]]  ;;  %v185_v1 = vld [vmem:[%s377_s0 + $0xc] sm:$0x3]  ;;  %v188_v9 = vld [vmem:[%s377_s0 + $0xe] sm:$0x3] }
  0x17   :  { %v61_v29 = vadd.f32 %v59_v15, %v52_v20  ;;  %v62_v30 = vadd.f32 %v60_v17, %v53_v22  ;;  %v82_v31 = vmul.f32 %v81_v27, %v78_v18  ;;  %v87_v32 = vstv %s275_s9  ;;  %s315_s30 = sld [smem:[#allocation2 + $0x102]] }
  0x18   :  { %v88_v34 = vmul.f32 %v168_v19, %v87_v32  ;;  %v95_v35 = vstv %s280_s12  ;;  %v83_v36 = vmul.f32 %v81_v27, %v79_v23  ;;  %v89_v37 = vmul.f32 %v169_v24, %v87_v32  ;;  %s324_s7 = sld [smem:[#allocation2 + $0x103]] }
  0x19   :  { %v70_v40 = vadd.f32 %v68_v21, %v61_v29  ;;  %v71_v41 = vadd.f32 %v69_v26, %v62_v30  ;;  %v96_v42 = vmul.f32 %v171_v28, %v95_v35  ;;  %v103_v43 = vstv %s285_s15  ;;  %s333_s12 = sld [smem:[#allocation4 + $0x2]] }
  0x1a   :  { %v90_v44 = vadd.f32 %v88_v34, %v82_v31  ;;  %v104_v45 = vmul.f32 %v174_v33, %v103_v43  ;;  %v91_v46 = vadd.f32 %v89_v37, %v83_v36  ;;  %v97_v51 = vmul.f32 %v172_v38, %v95_v35 }
  0x1b   :  { %v74_v49 = vadd.f32 %v73_v25, %v70_v40  ;;  %v75_v50 = vadd.f32 %v73_v25, %v71_v41  ;;  %v105_v52 = vmul.f32 %v175_v39, %v103_v43  ;;  %v109_v56 = vstv %s294_s20 }
  0x1c   :  { %v98_v55 = vadd.f32 %v96_v42, %v90_v44  ;;  %v118_v57 = vstv %s302_s24  ;;  %v124_v58 = vstv %s309_s27  ;;  %v99_v60 = vadd.f32 %v97_v51, %v91_v46 }
  0x1d   :  { %76 = vst [vmem:[%s380_s3] sm:$0x3] %v74_v49  ;;  %v119_v61 = vmul.f32 %v118_v57, %v115_v47  ;;  %v125_v62 = vmul.f32 %v181_v48, %v124_v58  ;;  %v132_v63 = vstv %s315_s30  ;;  %v120_v5 = vmul.f32 %v118_v57, %v116_v54 }
  0x1e   :  { %77 = vst [vmem:[%s380_s3 + $0x6] sm:$0x3] %v75_v50  ;;  %v106_v2 = vadd.f32 %v104_v45, %v98_v55  ;;  %v133_v3 = vmul.f32 %v184_v53, %v132_v63  ;;  %v140_v4 = vstv %s324_s7  ;;  %v107_v6 = vadd.f32 %v105_v52, %v99_v60 }
  0x1f   :  { %v127_v7 = vadd.f32 %v125_v62, %v119_v61  ;;  %v141_v8 = vmul.f32 %v187_v59, %v140_v4  ;;  %v126_v11 = vmul.f32 %v182_v0, %v124_v58  ;;  %v134_v12 = vmul.f32 %v185_v1, %v132_v63 }
  0x20   :  { %v110_v10 = vadd.f32 %v109_v56, %v106_v2  ;;  %v111_v13 = vadd.f32 %v109_v56, %v107_v6  ;;  %v146_v15 = vstv %s333_s12  ;;  %v142_v17 = vmul.f32 %v188_v9, %v140_v4 }
  0x21   :  { %v135_v14 = vadd.f32 %v133_v3, %v127_v7  ;;  %v128_v16 = vadd.f32 %v126_v11, %v120_v5 }
  0x22   :  { %178 = vst [vmem:[%s380_s3 + $0x2] sm:$0x3] %v110_v10 }
  0x23   :  { %179 = vst [vmem:[%s380_s3 + $0x8] sm:$0x3] %v111_v13  ;;  %v143_v18 = vadd.f32 %v141_v8, %v135_v14  ;;  %v136_v19 = vadd.f32 %v134_v12, %v128_v16 }
  0x25   :  { %v147_v20 = vadd.f32 %v146_v15, %v143_v18  ;;  %v144_v21 = vadd.f32 %v142_v17, %v136_v19 }
  0x27   :  { %191 = vst [vmem:[%s380_s3 + $0x4] sm:$0x3] %v147_v20  ;;  %v148_v22 = vadd.f32 %v146_v15, %v144_v21 }
  0x29   :  { %192 = vst [vmem:[%s380_s3 + $0xa] sm:$0x3] %v148_v22 }
  0x2a   :  { %156 = vsyncpa [#allocation3], 1 }
  0x2b   :  { %157 = vsyncpa [#allocation5], 1 }

</bundles_post_ra>
